<compile_context>
chip_gen: v7x
topology: tpu7x:2x2x1
jax: 0.10.0
libtpu: 0.0.40
codegen_flags: <defaults>
</compile_context>

<pallas_src>
import functools
import math

import jax
import jax.numpy as jnp
from jax.experimental import pallas as pl
from jax.experimental.pallas import tpu as pltpu


def _round_up(x, m):
    return ((x + m - 1) // m) * m


def _cdiv(a, b):
    return -(-a // b)


# ---------------------------------------------------------------------------
# Init-time packing (hoisted out of the per-call forward path).
# ---------------------------------------------------------------------------
def build_embedding_table(w1, w2):
    """Pack the two embedding tables once at init.

    Returns (table [V_pad, F_pad] f32, v1, f) where rows [0, V1) hold
    x_embedding1.weight, rows [V1, V1+V2) hold x_embedding2.weight and the rest
    is zero.  F is padded to a multiple of 128 so kernel stores are lane-dense
    unmasked vst; V is padded to one (or more) 128-row blocks.
    """
    v1, f = w1.shape
    v2, f2 = w2.shape
    assert f == f2, "both embedding tables must share the feature dim"
    f_pad = _round_up(f, 128)
    v_pad = _round_up(v1 + v2, 128)
    table = jnp.zeros((v_pad, f_pad), jnp.float32)
    table = table.at[:v1, :f].set(w1.astype(jnp.float32))
    table = table.at[v1:v1 + v2, :f].set(w2.astype(jnp.float32))
    return table, v1, f


# ---------------------------------------------------------------------------
# Kernel
# ---------------------------------------------------------------------------
def _embed_add_kernel(x_ref, w_ref, o_ref, *, v1, chunk, precision):
    # x_ref: [TILE_N, 2] int32   (col 0: atom-type id, col 1: chirality id)
    # w_ref: [V_pad, F_pad] f32  (rows [0,V1) = w1, rows [V1,V1+V2) = w2, rest 0)
    # o_ref: [TILE_N, F_pad] f32
    v_pad = w_ref.shape[0]
    n_chunks = o_ref.shape[0] // chunk  # static; wrapper guarantees divisibility

    def body(c, carry):
        r = pl.multiple_of(c * chunk, chunk)
        ids = x_ref[pl.ds(r, chunk), :]
        idx0 = ids[:, 0:1]                 # row idx0 of combined table
        idx1 = ids[:, 1:2] + v1            # row V1+idx1 of combined table
        lane = jax.lax.broadcasted_iota(jnp.int32, (chunk, v_pad), 1)
        onehot = jnp.logical_or(lane == idx0, lane == idx1).astype(w_ref.dtype)
        # One MXU contraction per chunk == w1[idx0] + w2[idx1] (one-hot entries
        # are exactly 0/1; adding zeros is exact).
        o_ref[pl.ds(r, chunk), :] = jnp.dot(
            onehot, w_ref[...],
            preferred_element_type=jnp.float32,
            precision=precision)
        return carry

    jax.lax.fori_loop(0, n_chunks, body, 0, unroll=True)


# ---------------------------------------------------------------------------
# Wrapper
# ---------------------------------------------------------------------------
def _pick_tiling(n, tile_n, chunk):
    """Pick (tile_n, chunk): tile_n a multiple of chunk; prefer an even tile
    count so v7x's two TensorCores get a balanced "parallel" split."""
    if n <= chunk:
        t = _round_up(max(n, 1), 8)
        return t, t
    tile_n = max(chunk, min(_round_up(tile_n, chunk), _round_up(n, chunk)))
    num_tiles = _cdiv(n, tile_n)
    if num_tiles > 1 and num_tiles % 2 == 1:
        for target in (num_tiles + 1, num_tiles - 1):       # both even
            cand = _round_up(_cdiv(n, target), chunk)
            if cand <= max(2 * tile_n, 2048) and _cdiv(n, cand) % 2 == 0:
                tile_n = cand
                break
    return tile_n, chunk


def encoder_support_forward(x, table, v1, *, tile_n=1024, chunk=256,
                            matmul_precision=None, trim_features_to=None):
    """Encoder_support forward: out[n] = w1[x[n,0]] + w2[x[n,1]].

    x:     [N, 2] int (atom-type id, chirality id)
    table: [V_pad, F_pad] f32 packed combined table (see build_embedding_table)
    Returns [N, F_pad] float32 (feature-padded slab; columns >= F are zero).
    Pass trim_features_to=F only if the consumer needs the unpadded layout
    (costs an extra HBM round-trip).
    Out-of-range / negative ids silently produce an all-zero row (unlike
    torch.nn.Embedding, which would raise).
    """
    n = x.shape[0]
    v_pad, f_pad = table.shape
    x = x.astype(jnp.int32)

    tile_n, chunk = _pick_tiling(n, tile_n, chunk)
    grid = (_cdiv(n, tile_n),)

    # Scoped-VMEM estimate: out + x double buffers, table (double-buffered by
    # default), one live one-hot chunk.  Only set an explicit limit when we
    # would brush v5e's 16 MiB scoped default (v6e/v7x defaults already cover it).
    vmem_bytes = (2 * tile_n * f_pad + 2 * tile_n * 2
                  + 2 * v_pad * f_pad + chunk * v_pad) * 4
    cparams = dict(dimension_semantics=("parallel",))
    if vmem_bytes > (14 << 20):
        cparams["vmem_limit_bytes"] = int(vmem_bytes * 2)

    out = pl.pallas_call(
        functools.partial(_embed_add_kernel, v1=v1, chunk=chunk,
                          precision=matmul_precision),
        out_shape=jax.ShapeDtypeStruct((n, f_pad), jnp.float32),
        grid_spec=pltpu.PrefetchScalarGridSpec(
            num_scalar_prefetch=0,
            grid=grid,
            in_specs=[
                pl.BlockSpec((tile_n, 2), lambda i: (i, 0)),      # node-id tile
                pl.BlockSpec((v_pad, f_pad), lambda i: (0, 0)),   # table resident
            ],
            out_specs=pl.BlockSpec((tile_n, f_pad), lambda i: (i, 0)),
        ),
        compiler_params=pltpu.CompilerParams(**cparams),
        cost_estimate=pl.CostEstimate(
            flops=2 * n * v_pad * f_pad,
            transcendentals=0,
            bytes_accessed=n * 2 * 4 + v_pad * f_pad * 4 + n * f_pad * 4),
    )(x, table)

    if trim_features_to is not None and trim_features_to != f_pad:
        out = out[:, :trim_features_to]
    return out


def xavier_uniform(key, shape, dtype=jnp.float32):
    fan_in, fan_out = shape[0], shape[1]
    bound = math.sqrt(6.0 / (fan_in + fan_out))
    return jax.random.uniform(key, shape, dtype=dtype, minval=-bound, maxval=bound)


if __name__ == "__main__":
    # Small, module-consistent sizes.
    num_atom_type = 16
    num_chirality_tag = 4
    num_features = 32

    key = jax.random.PRNGKey(0)
    k1, k2, k3 = jax.random.split(key, 3)

    # Deterministic parameter init (xavier_uniform, matching the PyTorch __init__).
    w1 = xavier_uniform(k1, (num_atom_type, num_features))       # x_embedding1.weight
    w2 = xavier_uniform(k2, (num_chirality_tag, num_features))   # x_embedding2.weight

    # (review item 1) Table packing happens ONCE at init, not per forward call.
    table, v1, f = build_embedding_table(w1, w2)

    # Exercise the single-tile path (N=8) and the multi-tile + ragged-block path.
    for num_nodes in (8, 1200):
        ka, kb = jax.random.split(jax.random.fold_in(k3, num_nodes), 2)
        atom_ids = jax.random.randint(ka, (num_nodes, 1), 0, num_atom_type,
                                      dtype=jnp.int32)
        chir_ids = jax.random.randint(kb, (num_nodes, 1), 0, num_chirality_tag,
                                      dtype=jnp.int32)
        x = jnp.concatenate([atom_ids, chir_ids], axis=1)         # [N, 2] int32

        out = jax.block_until_ready(encoder_support_forward(x, table, v1))

        # Reference check (plain JAX gather + add).  The kernel output is
        # feature-padded; padded columns must be exactly zero.
        ref = w1[x[:, 0]] + w2[x[:, 1]]
        assert out.shape == (num_nodes, table.shape[1])
        assert jnp.allclose(out[:, :f], ref, atol=1e-6), "mismatch vs reference"
        assert jnp.all(out[:, f:] == 0.0), "padded feature columns must be zero"

    print("KERNEL_OK")
</pallas_src>

<mosaic_0001>
module attributes {stable_mosaic.version = 11 : i64} {
  func.func @_embed_add_kernel(%arg0: i32, %arg1: memref<8x2xi32, #tpu.memory_space<vmem>>, %arg2: memref<128x128xf32, #tpu.memory_space<vmem>>, %arg3: memref<8x128xf32, #tpu.memory_space<vmem>>) attributes {dimension_semantics = [#tpu.dimension_semantics<parallel>], iteration_bounds = array<i64: 1>, scalar_prefetch = 0 : i64, scratch_operands = 0 : i64, tpu.core_type = #tpu.core_type<tc>, window_params = [{transform_indices = @transform_0, window_bounds = array<i64: 8, 2>}, {pipeline_mode = #tpu.pipeline_mode<synchronous>, transform_indices = @transform_1, window_bounds = array<i64: 128, 128>}, {transform_indices = @transform_2, window_bounds = array<i64: 8, 128>}]} {
    %c0_i32 = arith.constant 0 : i32
    %c8_i32 = arith.constant 8 : i32
    %0 = arith.muli %c0_i32, %c8_i32 : i32
    %1 = tpu.assume_multiple %0, 8 : i32
    %2 = arith.index_cast %1 : i32 to index
    %c0 = arith.constant 0 : index
    %3 = vector.load %arg1[%2, %c0] : memref<8x2xi32, #tpu.memory_space<vmem>>, vector<8x2xi32>
    %4 = vector.extract_strided_slice %3 {offsets = [0, 0], sizes = [8, 1], strides = [1, 1]} : vector<8x2xi32> to vector<8x1xi32>
    %5 = vector.extract_strided_slice %3 {offsets = [0, 1], sizes = [8, 1], strides = [1, 1]} : vector<8x2xi32> to vector<8x1xi32>
    %c16_i32 = arith.constant 16 : i32
    %6 = vector.broadcast %c16_i32 : i32 to vector<8x1xi32>
    %7 = arith.addi %5, %6 : vector<8x1xi32>
    %8 = tpu.iota {dimensions = array<i32: 1>} : vector<8x128xi32>
    %9 = vector.broadcast %4 : vector<8x1xi32> to vector<8x128xi32>
    %10 = arith.cmpi eq, %8, %9 : vector<8x128xi32>
    %11 = vector.broadcast %7 : vector<8x1xi32> to vector<8x128xi32>
    %12 = arith.cmpi eq, %8, %11 : vector<8x128xi32>
    %13 = arith.ori %10, %12 : vector<8x128xi1>
    %14 = arith.extui %13 : vector<8x128xi1> to vector<8x128xi32>
    %15 = arith.sitofp %14 : vector<8x128xi32> to vector<8x128xf32>
    %c0_0 = arith.constant 0 : index
    %c0_1 = arith.constant 0 : index
    %16 = vector.load %arg2[%c0_0, %c0_1] : memref<128x128xf32, #tpu.memory_space<vmem>>, vector<128x128xf32>
    %cst = arith.constant dense<0.000000e+00> : vector<8x128xf32>
    %17 = tpu.matmul %15, %16, %cst {dimension_numbers = #tpu.dot_dimension_numbers<[1], [0], [0], [1], [0, 0, 1, 1], [], []>} : vector<8x128xf32>, vector<128x128xf32>, vector<8x128xf32> -> vector<8x128xf32>
    %18 = arith.index_cast %1 : i32 to index
    %c0_2 = arith.constant 0 : index
    %19 = vector.load %arg3[%18, %c0_2] : memref<8x128xf32, #tpu.memory_space<vmem>>, vector<8x128xf32>
    tpu.vector_store %arg3[%18, %c0_2], %17 {strides = array<i32>} : memref<8x128xf32, #tpu.memory_space<vmem>>, vector<8x128xf32>,
    %c1_i32 = arith.constant 1 : i32
    return
  }
  func.func @transform_0(%arg0: i32) -> (i32, i32) {
    %c0_i32 = arith.constant 0 : i32
    %c0_i32_0 = arith.constant 0 : i32
    return %arg0, %c0_i32 : i32, i32
  }
  func.func @transform_1(%arg0: i32) -> (i32, i32) {
    %c0_i32 = arith.constant 0 : i32
    %c0_i32_0 = arith.constant 0 : i32
    %c0_i32_1 = arith.constant 0 : i32
    return %c0_i32, %c0_i32_0 : i32, i32
  }
  func.func @transform_2(%arg0: i32) -> (i32, i32) {
    %c0_i32 = arith.constant 0 : i32
    %c0_i32_0 = arith.constant 0 : i32
    return %arg0, %c0_i32 : i32, i32
  }
}

</mosaic_0001>

<bundles_post_ra>
// kernel: tpu_custom_call.1
= control target key start
LH: loop header
LB: loop body
LE: loop exit
PB: predicated region body
PF: predicated region fallthrough
CT: control target
= control target key end

     0   :  { %7 = vsyncpa [#allocation3], 0  ;;  %s333_s0 = inlined_call_operand.vmem [shape: s32[8,2], index: 0, kind: input, shape index: {}]   ;;  %s334_s1 = inlined_call_operand.hbm [shape: f32[128,128], index: 1, kind: input, shape index: {}]   ;;  %s335_s2 = inlined_call_operand.hbm [shape: f32[8,128], index: 2, kind: output, shape index: {}]  }
   0x1   :  { %8 = vsyncpa [#allocation4], 0  ;;  %s281_s9 = smov [#allocation2]   ;;  %s233_s13 = scalar_lea.hbm %s334_s1, 2048 }
   0x2   :  { %s16_s10 = sshll.u32 %s281_s9, 4  ;;  %p234_p0 = scmp.ne.s32.totalorder %s334_s1, %s233_s13  ;;  %s17_s10 = int_to_ptr.vmem [resolvable:$true] %s16_s10 }
   0x3   :  { %p237_p1 = scmp.lt.u32.totalorder %s233_s13, %s334_s1 }
   0x5   :  { %p239_p2 = pnand %p237_p1, %p234_p0 }
   0x7   :  { %242 = shalt.err (!%p239_p2)
}
   0x8   :  { %s243_s18 = scalar_lea.vmem %s17_s10, 2048  ;;  %p248_p4 = scmp.lt.s32.totalorder %s17_s10, %s17_s10 }
   0x9   :  { %p244_p3 = scmp.ne.s32.totalorder %s17_s10, %s243_s18  ;;  %p249_p5 = scmp.lt.s32.totalorder %s243_s18, %s243_s18 }
   0xb   :  { %p250_p6 = por %p249_p5, %p248_p4 }
   0xd   :  { %p251_p7 = pnand %p250_p6, %p244_p3 }
   0xf   :  { %254 = shalt.err (!%p251_p7)
}
  0x10   :  { %s282_s19 = smov 128   ;;  %s283_s20 = smov 8  }
  0x11   :  { %22 = dma.hbm_to_vmem [thread:$0]  %s334_s1, 2048, %s17_s10, [#allocation3], %s282_s19, %s282_s19, %s283_s20  }
  0x12   :  { %277 = dma.done.wait [#allocation3], 2048  }
  0x13   :  { %278 = vsyncadd [#allocation3], 4294965248  ;;  %v284_v0 = vmov 0   ;;  %v285_v1 = vmov 0.0|0.0   ;;  %v26_v2 = vld [vmem:[%s333_s0] sm:$0xff]  ;;  %v42_v4 = vld [vmem:[#allocation2 + $0x8] sm:$0xff]  ;;  %v28_v30 = vlaneseq }
  0x14   :  { %231 = vset.pattern.permute.xlu0 %v284_v0  ;;  %197 = vmatprep.subr.bf16.mxu0 %v285_v1  ;;  %v41_v3 = vld [vmem:[#allocation2] sm:$0xff]  ;;  %v43_v6 = vld [vmem:[#allocation2 + $0x10] sm:$0xff]  ;;  %v44_v7 = vld [vmem:[#allocation2 + $0x18] sm:$0xff]  ;;  %v27_v8 = vadd.s32 16, %v26_v2  ;;  %v286_v12 = vmov 1   ;;  %vm287_vm0 = vmmov 0  }
  0x15   :  { %31 = vperm.xlu0 %231, %v26_v2   ;;  %v198_v5 = vpack.c.bf16 %v42_v4, %v41_v3  ;;  %v201_v9 = vpack.c.bf16 %v44_v7, %v43_v6  ;;  %v45_v10 = vld [vmem:[#allocation2 + $0x20] sm:$0xff]  ;;  %v46_v11 = vld [vmem:[#allocation2 + $0x28] sm:$0xff]  ;;  %v288_v14 = vmov 0.0   ;;  %v47_v15 = vld [vmem:[#allocation2 + $0x30] sm:$0xff]  ;;  %v29_v32 = vand.u32 127, %v28_v30  ;;  %s290_s0 = smov [#allocation5]  }
  0x16   :  { %v204_v13 = vpack.c.bf16 %v46_v11, %v45_v10  ;;  %194 = vmatprep.mubr.msk.f32.mxu0 %vm287_vm0, %v288_v14  ;;  %v48_v16 = vld [vmem:[#allocation2 + $0x38] sm:$0xff]  ;;  %v49_v18 = vld [vmem:[#allocation2 + $0x40] sm:$0xff]  ;;  %v50_v19 = vld [vmem:[#allocation2 + $0x48] sm:$0xff]  ;;  %v289_v34 = vmov 1.0   ;;  %s134_s1 = sshll.u32 %s290_s0, 4  ;;  %s135_s1 = int_to_ptr.vmem [resolvable:$true] %s134_s1 }
  0x17   :  { %199 = vmatpush3.bf16.msra.mxu0 %v198_v5  ;;  %v207_v17 = vpack.c.bf16 %v48_v16, %v47_v15  ;;  %v210_v20 = vpack.c.bf16 %v50_v19, %v49_v18  ;;  %v51_v21 = vld [vmem:[#allocation2 + $0x50] sm:$0xff]  ;;  %v52_v22 = vld [vmem:[#allocation2 + $0x58] sm:$0xff]  ;;  %v53_v24 = vld [vmem:[#allocation2 + $0x60] sm:$0xff]  ;;  %s255_s25 = scalar_lea.vmem %s135_s1, 128  ;;  %p260_p9 = scmp.lt.s32.totalorder %s135_s1, %s135_s1 }
  0x18   :  { %200 = vmatprep.subr.bf16.mxu0 %v285_v1  ;;  %v213_v23 = vpack.c.bf16 %v52_v22, %v51_v21  ;;  %v54_v25 = vld [vmem:[#allocation2 + $0x68] sm:$0xff]  ;;  %v55_v27 = vld [vmem:[#allocation2 + $0x70] sm:$0xff]  ;;  %v56_v28 = vld [vmem:[#allocation2 + $0x78] sm:$0xff]  ;;  %p256_p8 = scmp.ne.s32.totalorder %s135_s1, %s255_s25  ;;  %p261_p10 = scmp.lt.s32.totalorder %s255_s25, %s255_s25 }
  0x19   :  { %232 = vset.pattern.permute.xlu0 %v286_v12  ;;  %v216_v26 = vpack.c.bf16 %v54_v25, %v53_v24  ;;  %v219_v29 = vpack.c.bf16 %v56_v28, %v55_v27 }
  0x1a   :  { %35 = vperm.xlu0 %232, %v27_v8   ;;  %p262_p11 = por %p261_p10, %p260_p9 }
  0x1b   :  { %202 = vmatpush3.bf16.msra.mxu0 %v201_v9 }
  0x1c   :  { %203 = vmatprep.subr.bf16.mxu0 %v285_v1  ;;  %p263_p12 = pnand %p262_p11, %p256_p8 }
  0x1f   :  { %205 = vmatpush3.bf16.msra.mxu0 %v204_v13 }
  0x20   :  { %206 = vmatprep.subr.bf16.mxu0 %v285_v1 }
  0x23   :  { %208 = vmatpush3.bf16.msra.mxu0 %v207_v17 }
  0x24   :  { %209 = vmatprep.subr.bf16.mxu0 %v285_v1 }
  0x27   :  { %211 = vmatpush3.bf16.msra.mxu0 %v210_v20 }
  0x28   :  { %212 = vmatprep.subr.bf16.mxu0 %v285_v1 }
  0x2b   :  { %214 = vmatpush3.bf16.msra.mxu0 %v213_v23 }
  0x2c   :  { %215 = vmatprep.subr.bf16.mxu0 %v285_v1 }
  0x2f   :  { %217 = vmatpush3.bf16.msra.mxu0 %v216_v26 }
  0x30   :  { %218 = vmatprep.subr.bf16.mxu0 %v285_v1 }
  0x33   :  { %220 = vmatpush3.bf16.msra.mxu0 %v219_v29 }
  0x94   :  { %v32_v31 = vpop.permute.xlu0 %31 }
  0x95   :  { %vm33_vm1 = vcmp.eq.s32.totalorder %v29_v32, %v32_v31 }
  0x99   :  { %v36_v33 = vpop.permute.xlu0 %35 }
  0x9a   :  { %vm37_vm2 = vcmp.eq.s32.totalorder %v29_v32, %v36_v33 }
  0x9b   :  { %vm38_vm3 = vmor %vm33_vm1, %vm37_vm2 }
  0x9c   :  { %195 = vmatmul.mubr.msk.f32.vlgmr.msra.gmra.mrb[0].mxu0 %vm38_vm3, %v289_v34 }
 0x16f   :  { %v123_v35 = vpop.f32.mrb[0].mxu0 }
 0x170   :  { %127 = vst [vmem:[#allocation5] sm:$0xff] %v123_v35  ;;  %v196_v36 = vpop.f32.mrb[1].mxu0 }
 0x171   :  { %266 = shalt.err (!%p263_p12)
}
 0x172   :  { %s267_s28 = scalar_lea.hbm %s335_s2, 128 }
 0x173   :  { %p268_p13 = scmp.ne.s32.totalorder %s335_s2, %s267_s28  ;;  %p271_p0 = scmp.lt.u32.totalorder %s267_s28, %s335_s2 }
 0x175   :  { %p273_p1 = pnand %p271_p0, %p268_p13 }
 0x177   :  { %276 = shalt.err (!%p273_p1)
}
 0x178   :  { %137 = dma.vmem_to_hbm [thread:$0]  %s135_s1, 128, %s335_s2, [#allocation4]  }
 0x179   :  { %279 = dma.done.wait [#allocation4], 128  }
 0x17a   :  { %280 = vsyncadd [#allocation4], 4294967168 }
 0x17b   :  { %141 = vsyncpa [#allocation3], 1 }
 0x17c   :  { %142 = vsyncpa [#allocation4], 1 }

</bundles_post_ra>
